<compile_context>
chip_gen: v5e
topology: v5e:2x2
jax: 0.10.0
libtpu: 0.0.40
codegen_flags: <defaults>
</compile_context>

<pallas_src>
import jax
import jax.numpy as jnp
from jax import lax
from jax.experimental import pallas as pl
from jax.experimental.pallas import tpu as pltpu


def _round_up(x, m):
    return ((x + m - 1) // m) * m


def _round_down(x, m):
    return max((x // m) * m, m)


# ----------------------------------------------------------------------------
# Kernels
# ----------------------------------------------------------------------------
def _linear_resident_kernel(x_ref, w_ref, b_ref, o_ref):
    """y = x @ W^T + b with the full weight resident in VMEM (single K slab).

    x_ref: (TM, K)      activation tile
    w_ref: (Np, K)      full weight, PyTorch layout [nclasses, nfeatures]
    b_ref: (1,  Np)     bias (lane-padded, f32)
    o_ref: (TM, Np)     output tile
    """
    acc = lax.dot_general(
        x_ref[...], w_ref[...],
        dimension_numbers=(((1,), (1,)), ((), ())),   # contract over K (trans_b)
        preferred_element_type=jnp.float32)
    o_ref[...] = (acc + b_ref[...]).astype(o_ref.dtype)


def _linear_ktiled_kernel(x_ref, w_ref, b_ref, o_ref, acc_ref):
    """K-tiled fallback for very large nfeatures (weight not VMEM-resident)."""
    k = pl.program_id(1)

    @pl.when(k == 0)
    def _():
        acc_ref[...] = jnp.zeros_like(acc_ref)

    acc_ref[...] += lax.dot_general(
        x_ref[...], w_ref[...],
        dimension_numbers=(((1,), (1,)), ((), ())),
        preferred_element_type=jnp.float32)

    @pl.when(k == pl.num_programs(1) - 1)
    def _():
        o_ref[...] = (acc_ref[...] + b_ref[...]).astype(o_ref.dtype)


# ----------------------------------------------------------------------------
# Wrapper
# ----------------------------------------------------------------------------
def classifier_forward(x, weight, bias, *, tm=1024, tk=2048,
                       compute_dtype=None,
                       max_resident_weight_bytes=8 << 20,
                       vmem_budget_bytes=40 << 20):
    """Pallas equivalent of Classifier.forward with Identity activation.

    x:       [batch, nfeatures]
    weight:  [nclasses, nfeatures]   (PyTorch nn.Linear layout, NOT transposed)
    bias:    [nclasses]
    returns  [batch, nclasses] in x.dtype
    """
    batch, nfeatures = x.shape
    nclasses, kf = weight.shape
    assert kf == nfeatures, "weight must be [nclasses, nfeatures]"
    out_dtype = x.dtype

    # Dtype handling: do NOT cast activations behind the caller's back (a
    # wrapper-side f32->bf16 cast costs an extra HBM pass over x).  Weight /
    # bias are tiny so aligning them is cheap.
    if compute_dtype is not None:
        x = x.astype(compute_dtype)
        weight = weight.astype(compute_dtype)
    elif weight.dtype != x.dtype:
        weight = weight.astype(x.dtype)
    bias = bias.astype(jnp.float32)

    in_itemsize = jnp.dtype(x.dtype).itemsize
    out_itemsize = jnp.dtype(out_dtype).itemsize

    # Lane-dense output / weight "class" dimension.
    n_pad = _round_up(max(nclasses, 1), 128)
    if n_pad != nclasses:
        w_p = jnp.pad(weight, ((0, n_pad - nclasses), (0, 0)))
        b_p = jnp.pad(bias, (0, n_pad - nclasses)).reshape(1, n_pad)
    else:
        w_p = weight
        b_p = bias.reshape(1, n_pad)

    w_bytes = n_pad * nfeatures * in_itemsize

    def pick_m_block(per_row_bytes, fixed_bytes):
        """Largest M tile (multiple of 8) that fits the VMEM byte budget."""
        m_cap = (vmem_budget_bytes - fixed_bytes) // max(per_row_bytes, 1)
        m_block = min(_round_up(tm, 8), _round_down(int(m_cap), 8))
        m_block = max(m_block, 8)
        if batch <= m_block:
            if batch >= 256:
                # Keep >= 2 "parallel" M tiles so both v7x TensorCores work.
                m_block = min(m_block, _round_up(pl.cdiv(batch, 2), 8))
            else:
                m_block = batch          # single full-extent block
        return m_block

    def vmem_limit(vmem_est):
        # Always set: raises v5e's 16 MiB default, never drops below the
        # v6e/v7x 32 MiB default, stays inside v7x's 64 MiB physical VMEM.
        return int(min(max(vmem_est * 3 // 2, 32 << 20), 48 << 20))

    if w_bytes <= max_resident_weight_bytes:
        # ---------------- Resident-weight fast path (common case) ----------
        fixed = 2 * w_bytes + 2 * n_pad * 4
        per_row = 2 * nfeatures * in_itemsize + 2 * n_pad * out_itemsize
        m_block = pick_m_block(per_row, fixed)
        grid_m = pl.cdiv(batch, m_block)
        vmem_est = fixed + m_block * per_row

        cost = pl.CostEstimate(
            flops=2 * batch * nfeatures * n_pad,
            transcendentals=0,
            bytes_accessed=(batch * nfeatures * in_itemsize     # x read once
                            + w_bytes                           # W read once
                            + n_pad * 4                         # bias
                            + batch * n_pad * out_itemsize))    # output

        out = pl.pallas_call(
            _linear_resident_kernel,
            out_shape=jax.ShapeDtypeStruct((batch, n_pad), out_dtype),
            grid=(grid_m,),
            in_specs=[
                pl.BlockSpec((m_block, nfeatures), lambda i: (i, 0)),  # x tiles
                pl.BlockSpec((n_pad, nfeatures), lambda i: (0, 0)),    # resident W
                pl.BlockSpec((1, n_pad), lambda i: (0, 0)),            # bias
            ],
            out_specs=pl.BlockSpec((m_block, n_pad), lambda i: (i, 0)),
            compiler_params=pltpu.CompilerParams(
                dimension_semantics=("parallel",),
                vmem_limit_bytes=vmem_limit(vmem_est)),
            cost_estimate=cost,
        )(x, w_p, b_p)

    else:
        # ---------------- K-tiled fallback (huge nfeatures) ----------------
        tk_r = max(_round_up(tk, 128), 128)
        # Keep double-buffered weight slabs inside half the budget.
        k_cap = (vmem_budget_bytes // 2) // max(2 * n_pad * in_itemsize, 1)
        k_cap = max(_round_down(int(k_cap), 128), 128)
        k_limit = min(tk_r, k_cap)

        # Prefer a multiple-of-128 divisor of nfeatures -> no K padding of x.
        k_block = None
        d = 128
        while d <= min(k_limit, nfeatures):
            if nfeatures % d == 0:
                k_block = d
            d += 128
        if k_block is None:
            k_block = k_limit
            k_pad = _round_up(nfeatures, k_block)
        else:
            k_pad = nfeatures

        x_p = x if k_pad == nfeatures else jnp.pad(x, ((0, 0), (0, k_pad - nfeatures)))
        w_pp = w_p if k_pad == nfeatures else jnp.pad(w_p, ((0, 0), (0, k_pad - nfeatures)))

        fixed = 2 * n_pad * k_block * in_itemsize + 2 * n_pad * 4
        per_row = (2 * k_block * in_itemsize        # x tiles (double-buffered)
                   + 2 * n_pad * out_itemsize       # out tiles
                   + n_pad * 4)                     # f32 accumulator
        m_block = pick_m_block(per_row, fixed)
        grid_m = pl.cdiv(batch, m_block)
        grid_k = k_pad // k_block
        vmem_est = fixed + m_block * per_row

        cost = pl.CostEstimate(
            flops=2 * batch * k_pad * n_pad,
            transcendentals=0,
            bytes_accessed=(batch * k_pad * in_itemsize
                            + grid_m * n_pad * k_pad * in_itemsize  # W per M tile
                            + n_pad * 4
                            + batch * n_pad * out_itemsize))

        out = pl.pallas_call(
            _linear_ktiled_kernel,
            out_shape=jax.ShapeDtypeStruct((batch, n_pad), out_dtype),
            grid=(grid_m, grid_k),
            in_specs=[
                pl.BlockSpec((m_block, k_block), lambda i, k: (i, k)),  # x
                pl.BlockSpec((n_pad, k_block), lambda i, k: (0, k)),    # W slab
                pl.BlockSpec((1, n_pad), lambda i, k: (0, 0)),          # bias
            ],
            out_specs=pl.BlockSpec((m_block, n_pad), lambda i, k: (i, 0)),
            scratch_shapes=[pltpu.VMEM((m_block, n_pad), jnp.float32)],
            compiler_params=pltpu.CompilerParams(
                dimension_semantics=("parallel", "arbitrary"),
                vmem_limit_bytes=vmem_limit(vmem_est)),
            cost_estimate=cost,
        )(x_p, w_pp, b_p)

    if n_pad != nclasses:
        out = out[:, :nclasses]
    return out


# ----------------------------------------------------------------------------
# Self-test
# ----------------------------------------------------------------------------
if __name__ == "__main__":
    key = jax.random.PRNGKey(0)
    kx, kw, kb, kx2, kw2, kb2 = jax.random.split(key, 6)

    # --- Small shapes consistent with the module: base_model(nfeatures, nclasses)
    batch, nfeatures, nclasses = 8, 32, 4
    x = jax.random.normal(kx, (batch, nfeatures), dtype=jnp.float32)
    # PyTorch Linear layout: [nclasses, nfeatures]; no transpose in the wrapper.
    weight = jax.random.normal(kw, (nclasses, nfeatures), dtype=jnp.float32) * 0.1
    bias = jax.random.normal(kb, (nclasses,), dtype=jnp.float32) * 0.1

    out = jax.block_until_ready(classifier_forward(x, weight, bias))
    ref = jnp.dot(x, weight.T, precision=lax.Precision.HIGHEST) + bias
    assert out.shape == (batch, nclasses)
    assert jnp.allclose(out, ref, atol=1e-5, rtol=1e-5)

    # --- Resident-weight path with M tiling (2 tiles), lane padding, and a
    #     non-divisible batch remainder handled without any padding of x.
    b2_, nf2, nc2 = 300, 384, 10
    x2 = jax.random.normal(kx2, (b2_, nf2), dtype=jnp.float32)
    w2 = jax.random.normal(kw2, (nc2, nf2), dtype=jnp.float32) * 0.05
    b2 = jax.random.normal(kb2, (nc2,), dtype=jnp.float32) * 0.05
    out2 = jax.block_until_ready(classifier_forward(x2, w2, b2))
    ref2 = jnp.dot(x2, w2.T, precision=lax.Precision.HIGHEST) + b2
    assert out2.shape == (b2_, nc2)
    assert jnp.allclose(out2, ref2, atol=1e-3, rtol=1e-3)

    # --- Force the K-tiled fallback (accumulator path) to validate it too.
    out3 = jax.block_until_ready(
        classifier_forward(x2, w2, b2, tk=128, max_resident_weight_bytes=0))
    assert out3.shape == (b2_, nc2)
    assert jnp.allclose(out3, ref2, atol=1e-3, rtol=1e-3)

    # TODO(synk): loss_object / weighted_loss / compute_loss / batch_predict /
    # save / load are training & I/O utilities, not part of forward; not
    # implemented as kernels.
    print("KERNEL_OK")
</pallas_src>

<mosaic_0001>
module attributes {stable_mosaic.version = 11 : i64} {
  func.func @_linear_resident_kernel(%arg0: i32, %arg1: memref<8x32xf32, #tpu.memory_space<vmem>>, %arg2: memref<128x32xf32, #tpu.memory_space<vmem>>, %arg3: memref<1x128xf32, #tpu.memory_space<vmem>>, %arg4: memref<8x128xf32, #tpu.memory_space<vmem>>) attributes {dimension_semantics = [#tpu.dimension_semantics<parallel>], iteration_bounds = array<i64: 1>, scalar_prefetch = 0 : i64, scratch_operands = 0 : i64, tpu.core_type = #tpu.core_type<tc>, window_params = [{transform_indices = @transform_0, window_bounds = array<i64: 8, 32>}, {pipeline_mode = #tpu.pipeline_mode<synchronous>, transform_indices = @transform_1, window_bounds = array<i64: 128, 32>}, {pipeline_mode = #tpu.pipeline_mode<synchronous>, transform_indices = @transform_2, window_bounds = array<i64: 1, 128>}, {transform_indices = @transform_3, window_bounds = array<i64: 8, 128>}]} {
    %c0 = arith.constant 0 : index
    %c0_0 = arith.constant 0 : index
    %0 = vector.load %arg1[%c0, %c0_0] : memref<8x32xf32, #tpu.memory_space<vmem>>, vector<8x32xf32>
    %c0_1 = arith.constant 0 : index
    %c0_2 = arith.constant 0 : index
    %1 = vector.load %arg2[%c0_1, %c0_2] : memref<128x32xf32, #tpu.memory_space<vmem>>, vector<128x32xf32>
    %cst = arith.constant dense<0.000000e+00> : vector<8x128xf32>
    %2 = tpu.matmul %0, %1, %cst {dimension_numbers = #tpu.dot_dimension_numbers<[1], [1], [0], [0], [0, 0, 1, 0], [], []>} : vector<8x32xf32>, vector<128x32xf32>, vector<8x128xf32> -> vector<8x128xf32>
    %c0_3 = arith.constant 0 : index
    %c0_4 = arith.constant 0 : index
    %3 = vector.load %arg3[%c0_3, %c0_4] : memref<1x128xf32, #tpu.memory_space<vmem>>, vector<1x128xf32>
    %4 = vector.broadcast %3 : vector<1x128xf32> to vector<8x128xf32>
    %5 = arith.addf %2, %4 : vector<8x128xf32>
    %c0_5 = arith.constant 0 : index
    %c0_6 = arith.constant 0 : index
    %6 = vector.load %arg4[%c0_5, %c0_6] : memref<8x128xf32, #tpu.memory_space<vmem>>, vector<8x128xf32>
    tpu.vector_store %arg4[%c0_5, %c0_6], %5 {strides = array<i32>} : memref<8x128xf32, #tpu.memory_space<vmem>>, vector<8x128xf32>,
    return
  }
  func.func @transform_0(%arg0: i32) -> (i32, i32) {
    %c0_i32 = arith.constant 0 : i32
    %c0_i32_0 = arith.constant 0 : i32
    return %arg0, %c0_i32 : i32, i32
  }
  func.func @transform_1(%arg0: i32) -> (i32, i32) {
    %c0_i32 = arith.constant 0 : i32
    %c0_i32_0 = arith.constant 0 : i32
    %c0_i32_1 = arith.constant 0 : i32
    return %c0_i32, %c0_i32_0 : i32, i32
  }
  func.func @transform_2(%arg0: i32) -> (i32, i32) {
    %c0_i32 = arith.constant 0 : i32
    %c0_i32_0 = arith.constant 0 : i32
    %c0_i32_1 = arith.constant 0 : i32
    return %c0_i32, %c0_i32_0 : i32, i32
  }
  func.func @transform_3(%arg0: i32) -> (i32, i32) {
    %c0_i32 = arith.constant 0 : i32
    %c0_i32_0 = arith.constant 0 : i32
    return %arg0, %c0_i32 : i32, i32
  }
}

</mosaic_0001>

<bundles_post_ra>
// kernel: tpu_custom_call.1
= control target key start
LH: loop header
LB: loop body
LE: loop exit
PB: predicated region body
PF: predicated region fallthrough
CT: control target
= control target key end

     0   :  { %vm36_vm0 = vcmask 261120   ;;  %s265_s0 = inlined_call_operand.vmem [shape: f32[8,32], index: 0, kind: input, shape index: {}]   ;;  %s266_s1 = inlined_call_operand.vmem [shape: f32[128,32], index: 1, kind: input, shape index: {}]   ;;  %s267_s2 = inlined_call_operand.vmem [shape: f32[1,128], index: 2, kind: input, shape index: {}]   ;;  %s268_s3 = inlined_call_operand.hbm [shape: f32[8,128], index: 3, kind: output, shape index: {}]  }
   0x1   :  { %v31_v0 = vld [vmem:[%s266_s1 + $0x78] sm:$0xff]  ;;  %v30_v1 = vld [vmem:[%s266_s1 + $0x70] sm:$0xff] }
   0x2   :  { %125 = vmatpush.xpose.msk.msra.mxu0 %vm36_vm0, %v31_v0 }
   0x3   :  { %8 = vsyncpa [#allocation3], 0  ;;  %v29_v2 = vld [vmem:[%s266_s1 + $0x68] sm:$0xff]  ;;  %v28_v3 = vld [vmem:[%s266_s1 + $0x60] sm:$0xff]  ;;  %s170_s21 = smov [#allocation2]   ;;  %s116_s25 = sshll.u32 %s268_s3, 4  ;;  %s117_s25 = int_to_ptr.hbm [resolvable:$true] %s116_s25 }
   0x4   :  { %v27_v4 = vld [vmem:[%s266_s1 + $0x58] sm:$0xff]  ;;  %v26_v5 = vld [vmem:[%s266_s1 + $0x50] sm:$0xff]  ;;  %v25_v6 = vld [vmem:[%s266_s1 + $0x48] sm:$0xff]  ;;  %s114_s22 = sshll.u32 %s170_s21, 4  ;;  %s115_s22 = int_to_ptr.vmem [resolvable:$true] %s114_s22 }
   0x5   :  { %v24_v7 = vld [vmem:[%s266_s1 + $0x40] sm:$0xff]  ;;  %v23_v8 = vld [vmem:[%s266_s1 + $0x38] sm:$0xff]  ;;  %v22_v9 = vld [vmem:[%s266_s1 + $0x30] sm:$0xff] }
   0x6   :  { %126 = vmatpush.xpose.msk.msra.mxu0 %vm36_vm0, %v30_v1  ;;  %v21_v10 = vld [vmem:[%s266_s1 + $0x28] sm:$0xff]  ;;  %v20_v11 = vld [vmem:[%s266_s1 + $0x20] sm:$0xff]  ;;  %v19_v12 = vld [vmem:[%s266_s1 + $0x18] sm:$0xff] }
   0x7   :  { %v18_v13 = vld [vmem:[%s266_s1 + $0x10] sm:$0xff]  ;;  %v17_v14 = vld [vmem:[%s266_s1 + $0x8] sm:$0xff]  ;;  %v16_v15 = vld [vmem:[%s266_s1] sm:$0xff] }
   0x8   :  { %v15_v16 = vld [vmem:[%s265_s0] sm:$0xff] }
   0x9   :  { %v143_v17 = vld [vmem:[%s267_s2] ss:$0 sm:$0xff] }
   0xa   :  { %127 = vmatpush.xpose.msk.msra.mxu0 %vm36_vm0, %v29_v2 }
   0xe   :  { %128 = vmatpush.xpose.msk.msra.mxu0 %vm36_vm0, %v28_v3 }
  0x12   :  { %129 = vmatpush.xpose.msk.msra.mxu0 %vm36_vm0, %v27_v4 }
  0x16   :  { %130 = vmatpush.xpose.msk.msra.mxu0 %vm36_vm0, %v26_v5 }
  0x1a   :  { %131 = vmatpush.xpose.msk.msra.mxu0 %vm36_vm0, %v25_v6 }
  0x1e   :  { %132 = vmatpush.xpose.msk.msra.mxu0 %vm36_vm0, %v24_v7 }
  0x22   :  { %133 = vmatpush.xpose.msk.msra.mxu0 %vm36_vm0, %v23_v8 }
  0x26   :  { %134 = vmatpush.xpose.msk.msra.mxu0 %vm36_vm0, %v22_v9 }
  0x2a   :  { %135 = vmatpush.xpose.msk.msra.mxu0 %vm36_vm0, %v21_v10 }
  0x2e   :  { %136 = vmatpush.xpose.msk.msra.mxu0 %vm36_vm0, %v20_v11 }
  0x32   :  { %137 = vmatpush.xpose.msk.msra.mxu0 %vm36_vm0, %v19_v12 }
  0x36   :  { %138 = vmatpush.xpose.msk.msra.mxu0 %vm36_vm0, %v18_v13 }
  0x3a   :  { %139 = vmatpush.xpose.msk.msra.mxu0 %vm36_vm0, %v17_v14 }
  0x3e   :  { %140 = vmatpush.xpose.msk.msra.mxu0 %vm36_vm0, %v16_v15 }
  0x41   :  { %141 = vmatmul.msk.f32.vlgmr.msra.gmra.mxu0 %vm36_vm0, %v15_v16 }
  0xbe   :  { %v105_v18 = vpop.f32.mrf.mxu0 }
  0xbf   :  { %v106_v19 = vadd.f32 %v143_v17, %v105_v18 }
  0xc1   :  { %108 = vst [vmem:[#allocation2] sm:$0xff] %v106_v19 }
  0xc2   :  { %119 = dma.vmem_to_hbm [thread:$0]  %s115_s22, 128, %s117_s25, [#allocation3]  }
  0xc3   :  { %168 = dma.done.wait [#allocation3], 128  }
  0xc4   :  { %169 = vsyncadd [#allocation3], 4294967168 }
  0xc5   :  { %124 = vsyncpa [#allocation3], 1 }

</bundles_post_ra>
